<compile_context>
chip_gen: v7x
topology: tpu7x:2x2x1
jax: 0.10.0
libtpu: 0.0.40
codegen_flags: <defaults>
</compile_context>

<pallas_src>
import functools

import jax
import jax.numpy as jnp
from jax.experimental import pallas as pl
from jax.experimental.pallas import tpu as pltpu

BN_EPS = 1e-5
LEAKY_SLOPE = 0.01  # PyTorch nn.LeakyReLU default

# Bias-slab row indices (static layout shared by wrapper and kernel).
_B_E1, _G_E1, _BE_E1 = 0, 1, 2
_B_E2, _G_E2, _BE_E2 = 3, 4, 5
_B_HEADS = 6
_B_1BLK = 7                 # [b_d1 | b_z1 | b_y1]   (width 3*h_n)
_G_D1, _BE_D1 = 8, 9
_B_D2, _G_D2, _BE_D2 = 10, 11, 12
_B_D3 = 13                  # full reconstruction bias (width input_len)
_B_2BLK = 14                # [b_z2 | b_y2]           (width 2*h2)
_B_3BLK = 15                # [b_z3 | b_y3]           (width 2)
_N_BIAS_ROWS = 16


# --------------------------------- kernel ------------------------------------
def aae_forward_kernel(
    # inputs
    x_ref,            # [B, input_len]   depths|tnfs (concatenated in wrapper)
    eps_ref,          # [B, ld]
    w_e1_ref,         # [input_len, h_n]
    w_hn_ref,         # [h_n, h_n + (2ld+y_len) + h_n + input_len]
    w_1_ref,          # [ld+y_len, 3*h_n]   block-diag: dec1 | disc_z1 | disc_y1
    w_2_ref,          # [2*h_n, 2*h2]       block-diag: disc_z2 | disc_y2
    w_3_ref,          # [2*h2, 2]           block-diag: disc_z3 | disc_y3
    bias_ref,         # [_N_BIAS_ROWS, slab_w]  packed biases / BN params (f32)
    # output
    out_ref,          # [B, 2ld + y_len + 2 + nsamples + ntnf]
    *, nsamples, ntnf, h_n, ld, y_len, h2,
):
    input_len = nsamples + ntnf
    heads_w = 2 * ld + y_len

    def row(i, width):
        # Static slice of the packed bias/BN slab (lane offset 0) -> [1, width].
        return bias_ref[i:i + 1, 0:width]

    def mm(x, w):
        # Weights may be pre-cast to bf16 in the wrapper; only cast the activation.
        return jnp.dot(x.astype(w.dtype), w, preferred_element_type=jnp.float32)

    def bn(x, g, b):
        # BatchNorm1d, training mode: batch mean / biased variance.
        mean = jnp.mean(x, axis=0, keepdims=True)
        var = jnp.mean((x - mean) ** 2, axis=0, keepdims=True)
        return (x - mean) * jax.lax.rsqrt(var + BN_EPS) * g + b

    def lrelu(x):
        return jnp.maximum(x, LEAKY_SLOPE * x)

    def softmax(x):
        m = jnp.max(x, axis=1, keepdims=True)
        e = jnp.exp(x - m)
        return e * pl.reciprocal(jnp.sum(e, axis=1, keepdims=True), approx=True)

    def sigmoid_exact(x):
        # exact reciprocal: dz/dy are only 2 lanes per row, essentially free.
        return 1.0 / (1.0 + jnp.exp(-x))

    x = x_ref[...]

    # Static lane slices of the K=h_n weight slab (ref slices -> cheap loads).
    c = 0
    w_e2 = w_hn_ref[:, c:c + h_n]; c += h_n
    w_heads = w_hn_ref[:, c:c + heads_w]; c += heads_w
    w_d2 = w_hn_ref[:, c:c + h_n]; c += h_n
    w_d3 = w_hn_ref[:, c:c + input_len]

    # ----- _encode -----
    h = mm(x, w_e1_ref[...]) + row(_B_E1, h_n)
    h = lrelu(bn(h, row(_G_E1, h_n), row(_BE_E1, h_n)))
    h = lrelu(bn(mm(h, w_e2) + row(_B_E2, h_n), row(_G_E2, h_n), row(_BE_E2, h_n)))

    # fused mu | logvar | y heads: one MXU push instead of three.
    heads = mm(h, w_heads) + row(_B_HEADS, heads_w)
    mu = heads[:, 0:ld]
    logvar = heads[:, ld:2 * ld]
    y = softmax(heads[:, 2 * ld:2 * ld + y_len])

    # ----- _reparameterization -----
    z = eps_ref[...] * jnp.exp(logvar * 0.5) + mu

    # ----- fused decoder layer 1 + discriminator_z/_y layer 1 (block-diag) -----
    zy = jnp.concatenate([z, y], axis=1)                      # [B, ld+y_len]
    s1 = mm(zy, w_1_ref[...]) + row(_B_1BLK, 3 * h_n)          # [B, 3*h_n]
    d = lrelu(bn(s1[:, 0:h_n], row(_G_D1, h_n), row(_BE_D1, h_n)))
    dzy1 = lrelu(s1[:, h_n:3 * h_n])                           # [B, 2*h_n] = dz1|dy1

    # ----- _decode (layers 2 & 3) -----
    d = lrelu(bn(mm(d, w_d2) + row(_B_D2, h_n), row(_G_D2, h_n), row(_BE_D2, h_n)))
    recon = mm(d, w_d3) + row(_B_D3, input_len)
    depths_out = softmax(recon[:, 0:nsamples])
    tnfs_out = recon[:, nsamples:input_len]

    # ----- fused discriminator layers 2 & 3 (block-diag) -----
    dzy2 = lrelu(mm(dzy1, w_2_ref[...]) + row(_B_2BLK, 2 * h2))   # [B, 2*h2]
    dzy3 = sigmoid_exact(mm(dzy2, w_3_ref[...]) + row(_B_3BLK, 2))  # [B, 2] = dz|dy

    # Single lane-dense output slab: one writeback DMA.
    out_ref[...] = jnp.concatenate([mu, z, y, dzy3, depths_out, tnfs_out], axis=1)


# -------------------------------- wrapper -------------------------------------
def aae_forward(depths, tnfs, eps, params, *, nsamples, nlatent_l, nlatent_y,
                use_bf16_matmul=False):
    B = depths.shape[0]
    ntnf = tnfs.shape[1]
    ld = nlatent_l
    y_len = nlatent_y
    input_len = nsamples + ntnf
    f32 = jnp.float32

    (w_e1, b_e1, g_e1, be_e1, w_e2, b_e2, g_e2, be_e2,
     w_mu, b_mu, w_lv, b_lv, w_yv, b_yv,
     w_d1, b_d1, g_d1, be_d1, w_d2, b_d2, g_d2, be_d2, w_d3, b_d3,
     w_z1, b_z1, w_z2, b_z2, w_z3, b_z3,
     w_y1, b_y1, w_y2, b_y2, w_y3, b_y3) = params

    h_n = w_e1.shape[1]
    h2 = w_z2.shape[1]

    # --- wrapper-side parameter re-packing (layout plumbing, not compute) ---
    x_in = jnp.concatenate([depths, tnfs], axis=1)            # [B, input_len]

    w_heads = jnp.concatenate([w_mu, w_lv, w_yv], axis=1)
    b_heads = jnp.concatenate([b_mu, b_lv, b_yv], axis=1)

    # K = h_n slab: one DMA for all hidden-input weights.
    w_hn = jnp.concatenate([w_e2, w_heads, w_d2, w_d3], axis=1)

    # K = ld+y_len block-diagonal slab: decoder L1 | disc_z L1 | disc_y L1.
    w_1blk = jnp.concatenate([
        jnp.concatenate([w_d1[:ld], w_z1, jnp.zeros((ld, h_n), f32)], axis=1),
        jnp.concatenate([w_d1[ld:], jnp.zeros((y_len, h_n), f32), w_y1], axis=1),
    ], axis=0)
    b_1blk = jnp.concatenate([b_d1, b_z1, b_y1], axis=1)

    # K = 2*h_n block-diagonal slab: disc_z L2 | disc_y L2.
    w_2blk = jnp.concatenate([
        jnp.concatenate([w_z2, jnp.zeros((h_n, h2), f32)], axis=1),
        jnp.concatenate([jnp.zeros((h_n, h2), f32), w_y2], axis=1),
    ], axis=0)
    b_2blk = jnp.concatenate([b_z2, b_y2], axis=1)

    # K = 2*h2 block-diagonal slab: disc_z L3 | disc_y L3.
    w_3blk = jnp.concatenate([
        jnp.concatenate([w_z3, jnp.zeros((h2, 1), f32)], axis=1),
        jnp.concatenate([jnp.zeros((h2, 1), f32), w_y3], axis=1),
    ], axis=0)
    b_3blk = jnp.concatenate([b_z3, b_y3], axis=1)

    bias_rows = [b_e1, g_e1, be_e1, b_e2, g_e2, be_e2, b_heads, b_1blk,
                 g_d1, be_d1, b_d2, g_d2, be_d2, b_d3, b_2blk, b_3blk]
    assert len(bias_rows) == _N_BIAS_ROWS
    slab_w = max(r.shape[1] for r in bias_rows)
    bias_slab = jnp.concatenate(
        [jnp.pad(r, ((0, 0), (0, slab_w - r.shape[1]))) for r in bias_rows], axis=0)

    # Pre-cast weight slabs (bf16 path halves weight DMA bytes & VMEM footprint).
    wdt = jnp.bfloat16 if use_bf16_matmul else jnp.float32
    weights = tuple(w.astype(wdt) for w in (w_e1, w_hn, w_1blk, w_2blk, w_3blk))

    args = (x_in, eps) + weights + (bias_slab,)

    out_w = 2 * ld + y_len + 2 + nsamples + ntnf
    out_shape = jax.ShapeDtypeStruct((B, out_w), f32)

    vmem_spec = pl.BlockSpec(memory_space=pltpu.MemorySpace.VMEM)
    kernel = functools.partial(
        aae_forward_kernel,
        nsamples=nsamples, ntnf=ntnf, h_n=h_n, ld=ld, y_len=y_len, h2=h2)

    packed = pl.pallas_call(
        kernel,
        out_shape=out_shape,
        in_specs=[vmem_spec] * len(args),
        out_specs=vmem_spec,
        compiler_params=pltpu.CompilerParams(vmem_limit_bytes=64 * 1024 * 1024),
    )(*args)

    # split the packed slab back into the module's outputs (cheap XLA slices)
    mu = packed[:, 0:ld]
    z = packed[:, ld:2 * ld]
    y = packed[:, 2 * ld:2 * ld + y_len]
    dz = packed[:, 2 * ld + y_len:2 * ld + y_len + 1]
    dy = packed[:, 2 * ld + y_len + 1:2 * ld + y_len + 2]
    o = 2 * ld + y_len + 2
    depths_out = packed[:, o:o + nsamples]
    tnfs_out = packed[:, o + nsamples:o + nsamples + ntnf]
    return mu, depths_out, tnfs_out, z, y, dz, dy


# --------------------------- deterministic params -----------------------------
def init_params(key, *, input_len, h_n, ld, y_len):
    """Returns params in the original (un-packed) module order.
    Linear weights are [in, out]; biases / BN params are [1, out]."""
    params = []
    keys = iter(jax.random.split(key, 64))

    def lin(n_in, n_out):
        scale = 1.0 / jnp.sqrt(jnp.float32(n_in))
        w = jax.random.uniform(next(keys), (n_in, n_out), jnp.float32, -scale, scale)
        b = jax.random.uniform(next(keys), (1, n_out), jnp.float32, -scale, scale)
        params.extend([w, b])

    def bn(n):
        params.extend([jnp.ones((1, n), jnp.float32), jnp.zeros((1, n), jnp.float32)])

    h2 = int(h_n / 2)
    # encoder
    lin(input_len, h_n); bn(h_n)
    lin(h_n, h_n);       bn(h_n)
    # heads
    lin(h_n, ld)     # mu
    lin(h_n, ld)     # logvar
    lin(h_n, y_len)  # y_vector
    # decoder
    lin(ld + y_len, h_n); bn(h_n)
    lin(h_n, h_n);        bn(h_n)
    lin(h_n, input_len)
    # discriminator_z
    lin(ld, h_n); lin(h_n, h2); lin(h2, 1)
    # discriminator_y
    lin(y_len, h_n); lin(h_n, h2); lin(h2, 1)
    return params


# --------------------------- pure-JAX reference --------------------------------
def aae_forward_ref(depths, tnfs, eps, params, *, nsamples):
    p = list(params)

    def pop():
        return p.pop(0)

    def lin(x):
        w, b = pop(), pop()
        # HIGHEST precision so the f32 reference matches the kernel's f32
        # (multi-pass MXU) matmuls instead of XLA's default bf16 fast path.
        return jnp.dot(x, w, precision=jax.lax.Precision.HIGHEST) + b

    def bn(x):
        g, be = pop(), pop()
        m = jnp.mean(x, axis=0, keepdims=True)
        v = jnp.mean((x - m) ** 2, axis=0, keepdims=True)
        return (x - m) / jnp.sqrt(v + BN_EPS) * g + be

    lrelu = lambda x: jnp.where(x >= 0, x, LEAKY_SLOPE * x)

    x = jnp.concatenate([depths, tnfs], axis=1)
    h = lrelu(bn(lin(x)))
    h = lrelu(bn(lin(h)))
    mu = lin(h)
    logvar = lin(h)
    y = jax.nn.softmax(lin(h), axis=1)
    z = eps * jnp.exp(logvar / 2) + mu
    d = lrelu(bn(lin(jnp.concatenate([z, y], axis=1))))
    d = lrelu(bn(lin(d)))
    recon = lin(d)
    depths_out = jax.nn.softmax(recon[:, :nsamples], axis=1)
    tnfs_out = recon[:, nsamples:]
    dz = jax.nn.sigmoid(lin(lrelu(lin(lrelu(lin(z))))))
    dy = jax.nn.sigmoid(lin(lrelu(lin(lrelu(lin(y))))))
    return mu, depths_out, tnfs_out, z, y, dz, dy


# ----------------------------------- main --------------------------------------
if __name__ == "__main__":
    # small but representative hyperparameters
    nsamples = 4
    nhiddens = 32
    nlatent_l = 8
    nlatent_y = 16
    input_len = 103 + nsamples   # as in the PyTorch module
    batch = 8

    key = jax.random.PRNGKey(0)
    k_d, k_t, k_e, k_p = jax.random.split(key, 4)

    depths_raw = jax.random.uniform(k_d, (batch, nsamples), jnp.float32) + 1e-3
    depths_in = depths_raw / jnp.sum(depths_raw, axis=1, keepdims=True)
    tnfs_in = jax.random.normal(k_t, (batch, 103), jnp.float32)
    eps = jax.random.normal(k_e, (batch, nlatent_l), jnp.float32)

    params = init_params(k_p, input_len=input_len, h_n=nhiddens,
                         ld=nlatent_l, y_len=nlatent_y)

    # f32 MXU path (default): checked against the pure-JAX reference.
    outs = aae_forward(depths_in, tnfs_in, eps, params,
                       nsamples=nsamples, nlatent_l=nlatent_l, nlatent_y=nlatent_y)
    outs = jax.block_until_ready(outs)

    refs = aae_forward_ref(depths_in, tnfs_in, eps, params, nsamples=nsamples)
    # softmax outputs (and their descendants) use the EUP approx reciprocal
    # -> slightly looser bounds; sigmoid uses an exact reciprocal.
    #        mu     depths tnfs   z      y      dz     dy
    tols = (1e-3, 5e-3, 2e-3, 1e-3, 5e-3, 5e-3, 5e-3)
    for o, r, tol in zip(outs, refs, tols):
        assert o.shape == r.shape and o.dtype == r.dtype
        err = float(jnp.max(jnp.abs(o - r)))
        assert err < tol, (o.shape, err)

    # bf16 MXU path (v5e/v6e/v7x native): check it compiles/runs and is sane.
    outs_bf16 = jax.block_until_ready(
        aae_forward(depths_in, tnfs_in, eps, params, nsamples=nsamples,
                    nlatent_l=nlatent_l, nlatent_y=nlatent_y,
                    use_bf16_matmul=True))
    for o, r in zip(outs_bf16, refs):
        assert o.shape == r.shape
        assert bool(jnp.all(jnp.isfinite(o)))
        assert float(jnp.max(jnp.abs(o - r))) < 0.3

    print("KERNEL_OK")
</pallas_src>

<mosaic_0001>
module attributes {stable_mosaic.version = 11 : i64} {
  func.func @aae_forward_kernel(%arg0: memref<8x107xf32, #tpu.memory_space<vmem>>, %arg1: memref<8x8xf32, #tpu.memory_space<vmem>>, %arg2: memref<107x32xf32, #tpu.memory_space<vmem>>, %arg3: memref<32x203xf32, #tpu.memory_space<vmem>>, %arg4: memref<24x96xf32, #tpu.memory_space<vmem>>, %arg5: memref<64x32xf32, #tpu.memory_space<vmem>>, %arg6: memref<32x2xf32, #tpu.memory_space<vmem>>, %arg7: memref<16x107xf32, #tpu.memory_space<vmem>>, %arg8: memref<8x141xf32, #tpu.memory_space<vmem>>) attributes {dimension_semantics = [], scalar_prefetch = 0 : i64, scratch_operands = 0 : i64, tpu.core_type = #tpu.core_type<tc>} {
    %c0 = arith.constant 0 : index
    %c0_0 = arith.constant 0 : index
    %0 = vector.load %arg0[%c0, %c0_0] : memref<8x107xf32, #tpu.memory_space<vmem>>, vector<8x107xf32>
    %c0_1 = arith.constant 0 : index
    %c0_2 = arith.constant 0 : index
    %1 = vector.load %arg3[%c0_1, %c0_2] : memref<32x203xf32, #tpu.memory_space<vmem>>, vector<32x32xf32>
    %c0_3 = arith.constant 0 : index
    %c32 = arith.constant 32 : index
    %2 = vector.load %arg3[%c0_3, %c32] : memref<32x203xf32, #tpu.memory_space<vmem>>, vector<32x32xf32>
    %c0_4 = arith.constant 0 : index
    %c64 = arith.constant 64 : index
    %3 = vector.load %arg3[%c0_4, %c64] : memref<32x203xf32, #tpu.memory_space<vmem>>, vector<32x32xf32>
    %c0_5 = arith.constant 0 : index
    %c96 = arith.constant 96 : index
    %4 = vector.load %arg3[%c0_5, %c96] : memref<32x203xf32, #tpu.memory_space<vmem>>, vector<32x107xf32>
    %c0_6 = arith.constant 0 : index
    %c0_7 = arith.constant 0 : index
    %5 = vector.load %arg2[%c0_6, %c0_7] : memref<107x32xf32, #tpu.memory_space<vmem>>, vector<107x32xf32>
    %cst = arith.constant dense<0.000000e+00> : vector<8x32xf32>
    %6 = tpu.matmul %0, %5, %cst {dimension_numbers = #tpu.dot_dimension_numbers<[1], [0], [0], [1], [0, 0, 1, 1], [], []>} : vector<8x107xf32>, vector<107x32xf32>, vector<8x32xf32> -> vector<8x32xf32>
    %c0_8 = arith.constant 0 : index
    %c0_9 = arith.constant 0 : index
    %7 = vector.load %arg7[%c0_8, %c0_9] : memref<16x107xf32, #tpu.memory_space<vmem>>, vector<1x32xf32>
    %8 = vector.broadcast %7 : vector<1x32xf32> to vector<8x32xf32>
    %9 = arith.addf %6, %8 : vector<8x32xf32>
    %c1 = arith.constant 1 : index
    %c0_10 = arith.constant 0 : index
    %10 = vector.load %arg7[%c1, %c0_10] : memref<16x107xf32, #tpu.memory_space<vmem>>, vector<1x32xf32>
    %c2 = arith.constant 2 : index
    %c0_11 = arith.constant 0 : index
    %11 = vector.load %arg7[%c2, %c0_11] : memref<16x107xf32, #tpu.memory_space<vmem>>, vector<1x32xf32>
    %cst_12 = arith.constant dense<0.000000e+00> : vector<32xf32>
    %12 = vector.multi_reduction <add>, %9, %cst_12 [0] : vector<8x32xf32> to vector<32xf32>
    %13 = vector.shape_cast %12 : vector<32xf32> to vector<1x32xf32>
    %cst_13 = arith.constant 8.000000e+00 : f32
    %14 = vector.broadcast %cst_13 : f32 to vector<1x32xf32>
    %15 = arith.divf %13, %14 : vector<1x32xf32>
    %16 = vector.broadcast %15 : vector<1x32xf32> to vector<8x32xf32>
    %17 = arith.subf %9, %16 : vector<8x32xf32>
    %18 = arith.mulf %17, %17 : vector<8x32xf32>
    %cst_14 = arith.constant dense<0.000000e+00> : vector<32xf32>
    %19 = vector.multi_reduction <add>, %18, %cst_14 [0] : vector<8x32xf32> to vector<32xf32>
    %20 = vector.shape_cast %19 : vector<32xf32> to vector<1x32xf32>
    %cst_15 = arith.constant 8.000000e+00 : f32
    %21 = vector.broadcast %cst_15 : f32 to vector<1x32xf32>
    %22 = arith.divf %20, %21 : vector<1x32xf32>
    %23 = vector.broadcast %15 : vector<1x32xf32> to vector<8x32xf32>
    %24 = arith.subf %9, %23 : vector<8x32xf32>
    %cst_16 = arith.constant 9.99999974E-6 : f32
    %25 = vector.broadcast %cst_16 : f32 to vector<1x32xf32>
    %26 = arith.addf %22, %25 : vector<1x32xf32>
    %27 = math.rsqrt %26 : vector<1x32xf32>
    %28 = vector.broadcast %27 : vector<1x32xf32> to vector<8x32xf32>
    %29 = arith.mulf %24, %28 : vector<8x32xf32>
    %30 = vector.broadcast %10 : vector<1x32xf32> to vector<8x32xf32>
    %31 = arith.mulf %29, %30 : vector<8x32xf32>
    %32 = vector.broadcast %11 : vector<1x32xf32> to vector<8x32xf32>
    %33 = arith.addf %31, %32 : vector<8x32xf32>
    %cst_17 = arith.constant 0.00999999977 : f32
    %34 = vector.broadcast %cst_17 : f32 to vector<8x32xf32>
    %35 = arith.mulf %34, %33 : vector<8x32xf32>
    %36 = arith.maximumf %33, %35 : vector<8x32xf32>
    %cst_18 = arith.constant dense<0.000000e+00> : vector<8x32xf32>
    %37 = tpu.matmul %36, %1, %cst_18 {dimension_numbers = #tpu.dot_dimension_numbers<[1], [0], [0], [1], [0, 0, 1, 1], [], []>} : vector<8x32xf32>, vector<32x32xf32>, vector<8x32xf32> -> vector<8x32xf32>
    %c3 = arith.constant 3 : index
    %c0_19 = arith.constant 0 : index
    %38 = vector.load %arg7[%c3, %c0_19] : memref<16x107xf32, #tpu.memory_space<vmem>>, vector<1x32xf32>
    %39 = vector.broadcast %38 : vector<1x32xf32> to vector<8x32xf32>
    %40 = arith.addf %37, %39 : vector<8x32xf32>
    %c4 = arith.constant 4 : index
    %c0_20 = arith.constant 0 : index
    %41 = vector.load %arg7[%c4, %c0_20] : memref<16x107xf32, #tpu.memory_space<vmem>>, vector<1x32xf32>
    %c5 = arith.constant 5 : index
    %c0_21 = arith.constant 0 : index
    %42 = vector.load %arg7[%c5, %c0_21] : memref<16x107xf32, #tpu.memory_space<vmem>>, vector<1x32xf32>
    %cst_22 = arith.constant dense<0.000000e+00> : vector<32xf32>
    %43 = vector.multi_reduction <add>, %40, %cst_22 [0] : vector<8x32xf32> to vector<32xf32>
    %44 = vector.shape_cast %43 : vector<32xf32> to vector<1x32xf32>
    %cst_23 = arith.constant 8.000000e+00 : f32
    %45 = vector.broadcast %cst_23 : f32 to vector<1x32xf32>
    %46 = arith.divf %44, %45 : vector<1x32xf32>
    %47 = vector.broadcast %46 : vector<1x32xf32> to vector<8x32xf32>
    %48 = arith.subf %40, %47 : vector<8x32xf32>
    %49 = arith.mulf %48, %48 : vector<8x32xf32>
    %cst_24 = arith.constant dense<0.000000e+00> : vector<32xf32>
    %50 = vector.multi_reduction <add>, %49, %cst_24 [0] : vector<8x32xf32> to vector<32xf32>
    %51 = vector.shape_cast %50 : vector<32xf32> to vector<1x32xf32>
    %cst_25 = arith.constant 8.000000e+00 : f32
    %52 = vector.broadcast %cst_25 : f32 to vector<1x32xf32>
    %53 = arith.divf %51, %52 : vector<1x32xf32>
    %54 = vector.broadcast %46 : vector<1x32xf32> to vector<8x32xf32>
    %55 = arith.subf %40, %54 : vector<8x32xf32>
    %cst_26 = arith.constant 9.99999974E-6 : f32
    %56 = vector.broadcast %cst_26 : f32 to vector<1x32xf32>
    %57 = arith.addf %53, %56 : vector<1x32xf32>
    %58 = math.rsqrt %57 : vector<1x32xf32>
    %59 = vector.broadcast %58 : vector<1x32xf32> to vector<8x32xf32>
    %60 = arith.mulf %55, %59 : vector<8x32xf32>
    %61 = vector.broadcast %41 : vector<1x32xf32> to vector<8x32xf32>
    %62 = arith.mulf %60, %61 : vector<8x32xf32>
    %63 = vector.broadcast %42 : vector<1x32xf32> to vector<8x32xf32>
    %64 = arith.addf %62, %63 : vector<8x32xf32>
    %cst_27 = arith.constant 0.00999999977 : f32
    %65 = vector.broadcast %cst_27 : f32 to vector<8x32xf32>
    %66 = arith.mulf %65, %64 : vector<8x32xf32>
    %67 = arith.maximumf %64, %66 : vector<8x32xf32>
    %cst_28 = arith.constant dense<0.000000e+00> : vector<8x32xf32>
    %68 = tpu.matmul %67, %2, %cst_28 {dimension_numbers = #tpu.dot_dimension_numbers<[1], [0], [0], [1], [0, 0, 1, 1], [], []>} : vector<8x32xf32>, vector<32x32xf32>, vector<8x32xf32> -> vector<8x32xf32>
    %c6 = arith.constant 6 : index
    %c0_29 = arith.constant 0 : index
    %69 = vector.load %arg7[%c6, %c0_29] : memref<16x107xf32, #tpu.memory_space<vmem>>, vector<1x32xf32>
    %70 = vector.broadcast %69 : vector<1x32xf32> to vector<8x32xf32>
    %71 = arith.addf %68, %70 : vector<8x32xf32>
    %72 = vector.extract_strided_slice %71 {offsets = [0, 0], sizes = [8, 8], strides = [1, 1]} : vector<8x32xf32> to vector<8x8xf32>
    %73 = vector.extract_strided_slice %71 {offsets = [0, 8], sizes = [8, 8], strides = [1, 1]} : vector<8x32xf32> to vector<8x8xf32>
    %74 = vector.extract_strided_slice %71 {offsets = [0, 16], sizes = [8, 16], strides = [1, 1]} : vector<8x32xf32> to vector<8x16xf32>
    %cst_30 = arith.constant dense<0xFF800000> : vector<8xf32>
    %75 = vector.multi_reduction <maximumf>, %74, %cst_30 [1] : vector<8x16xf32> to vector<8xf32>
    %76 = vector.shape_cast %75 : vector<8xf32> to vector<8x1xf32>
    %77 = vector.broadcast %76 : vector<8x1xf32> to vector<8x16xf32>
    %78 = arith.subf %74, %77 : vector<8x16xf32>
    %79 = math.exp %78 : vector<8x16xf32>
    %cst_31 = arith.constant dense<0.000000e+00> : vector<8xf32>
    %80 = vector.multi_reduction <add>, %79, %cst_31 [1] : vector<8x16xf32> to vector<8xf32>
    %81 = vector.shape_cast %80 : vector<8xf32> to vector<8x1xf32>
    %82 = tpu.reciprocal %81 {approx = true} : vector<8x1xf32> -> vector<8x1xf32>
    %83 = vector.broadcast %82 : vector<8x1xf32> to vector<8x16xf32>
    %84 = arith.mulf %79, %83 : vector<8x16xf32>
    %c0_32 = arith.constant 0 : index
    %c0_33 = arith.constant 0 : index
    %85 = vector.load %arg1[%c0_32, %c0_33] : memref<8x8xf32, #tpu.memory_space<vmem>>, vector<8x8xf32>
    %cst_34 = arith.constant 5.000000e-01 : f32
    %86 = vector.broadcast %cst_34 : f32 to vector<8x8xf32>
    %87 = arith.mulf %73, %86 : vector<8x8xf32>
    %88 = math.exp %87 : vector<8x8xf32>
    %89 = arith.mulf %85, %88 : vector<8x8xf32>
    %90 = arith.addf %89, %72 : vector<8x8xf32>
    %91 = tpu.concatenate %90, %84 in 1 : vector<8x8xf32>, vector<8x16xf32> -> vector<8x24xf32>
    %c0_35 = arith.constant 0 : index
    %c0_36 = arith.constant 0 : index
    %92 = vector.load %arg4[%c0_35, %c0_36] : memref<24x96xf32, #tpu.memory_space<vmem>>, vector<24x96xf32>
    %cst_37 = arith.constant dense<0.000000e+00> : vector<8x96xf32>
    %93 = tpu.matmul %91, %92, %cst_37 {dimension_numbers = #tpu.dot_dimension_numbers<[1], [0], [0], [1], [0, 0, 1, 1], [], []>} : vector<8x24xf32>, vector<24x96xf32>, vector<8x96xf32> -> vector<8x96xf32>
    %c7 = arith.constant 7 : index
    %c0_38 = arith.constant 0 : index
    %94 = vector.load %arg7[%c7, %c0_38] : memref<16x107xf32, #tpu.memory_space<vmem>>, vector<1x96xf32>
    %95 = vector.broadcast %94 : vector<1x96xf32> to vector<8x96xf32>
    %96 = arith.addf %93, %95 : vector<8x96xf32>
    %97 = vector.extract_strided_slice %96 {offsets = [0, 0], sizes = [8, 32], strides = [1, 1]} : vector<8x96xf32> to vector<8x32xf32>
    %c8 = arith.constant 8 : index
    %c0_39 = arith.constant 0 : index
    %98 = vector.load %arg7[%c8, %c0_39] : memref<16x107xf32, #tpu.memory_space<vmem>>, vector<1x32xf32>
    %c9 = arith.constant 9 : index
    %c0_40 = arith.constant 0 : index
    %99 = vector.load %arg7[%c9, %c0_40] : memref<16x107xf32, #tpu.memory_space<vmem>>, vector<1x32xf32>
    %cst_41 = arith.constant dense<0.000000e+00> : vector<32xf32>
    %100 = vector.multi_reduction <add>, %97, %cst_41 [0] : vector<8x32xf32> to vector<32xf32>
    %101 = vector.shape_cast %100 : vector<32xf32> to vector<1x32xf32>
    %cst_42 = arith.constant 8.000000e+00 : f32
    %102 = vector.broadcast %cst_42 : f32 to vector<1x32xf32>
    %103 = arith.divf %101, %102 : vector<1x32xf32>
    %104 = vector.broadcast %103 : vector<1x32xf32> to vector<8x32xf32>
    %105 = arith.subf %97, %104 : vector<8x32xf32>
    %106 = arith.mulf %105, %105 : vector<8x32xf32>
    %cst_43 = arith.constant dense<0.000000e+00> : vector<32xf32>
    %107 = vector.multi_reduction <add>, %106, %cst_43 [0] : vector<8x32xf32> to vector<32xf32>
    %108 = vector.shape_cast %107 : vector<32xf32> to vector<1x32xf32>
    %cst_44 = arith.constant 8.000000e+00 : f32
    %109 = vector.broadcast %cst_44 : f32 to vector<1x32xf32>
    %110 = arith.divf %108, %109 : vector<1x32xf32>
    %111 = vector.broadcast %103 : vector<1x32xf32> to vector<8x32xf32>
    %112 = arith.subf %97, %111 : vector<8x32xf32>
    %cst_45 = arith.constant 9.99999974E-6 : f32
    %113 = vector.broadcast %cst_45 : f32 to vector<1x32xf32>
    %114 = arith.addf %110, %113 : vector<1x32xf32>
    %115 = math.rsqrt %114 : vector<1x32xf32>
    %116 = vector.broadcast %115 : vector<1x32xf32> to vector<8x32xf32>
    %117 = arith.mulf %112, %116 : vector<8x32xf32>
    %118 = vector.broadcast %98 : vector<1x32xf32> to vector<8x32xf32>
    %119 = arith.mulf %117, %118 : vector<8x32xf32>
    %120 = vector.broadcast %99 : vector<1x32xf32> to vector<8x32xf32>
    %121 = arith.addf %119, %120 : vector<8x32xf32>
    %cst_46 = arith.constant 0.00999999977 : f32
    %122 = vector.broadcast %cst_46 : f32 to vector<8x32xf32>
    %123 = arith.mulf %122, %121 : vector<8x32xf32>
    %124 = arith.maximumf %121, %123 : vector<8x32xf32>
    %125 = vector.extract_strided_slice %96 {offsets = [0, 32], sizes = [8, 64], strides = [1, 1]} : vector<8x96xf32> to vector<8x64xf32>
    %cst_47 = arith.constant 0.00999999977 : f32
    %126 = vector.broadcast %cst_47 : f32 to vector<8x64xf32>
    %127 = arith.mulf %126, %125 : vector<8x64xf32>
    %128 = arith.maximumf %125, %127 : vector<8x64xf32>
    %cst_48 = arith.constant dense<0.000000e+00> : vector<8x32xf32>
    %129 = tpu.matmul %124, %3, %cst_48 {dimension_numbers = #tpu.dot_dimension_numbers<[1], [0], [0], [1], [0, 0, 1, 1], [], []>} : vector<8x32xf32>, vector<32x32xf32>, vector<8x32xf32> -> vector<8x32xf32>
    %c10 = arith.constant 10 : index
    %c0_49 = arith.constant 0 : index
    %130 = vector.load %arg7[%c10, %c0_49] : memref<16x107xf32, #tpu.memory_space<vmem>>, vector<1x32xf32>
    %131 = vector.broadcast %130 : vector<1x32xf32> to vector<8x32xf32>
    %132 = arith.addf %129, %131 : vector<8x32xf32>
    %c11 = arith.constant 11 : index
    %c0_50 = arith.constant 0 : index
    %133 = vector.load %arg7[%c11, %c0_50] : memref<16x107xf32, #tpu.memory_space<vmem>>, vector<1x32xf32>
    %c12 = arith.constant 12 : index
    %c0_51 = arith.constant 0 : index
    %134 = vector.load %arg7[%c12, %c0_51] : memref<16x107xf32, #tpu.memory_space<vmem>>, vector<1x32xf32>
    %cst_52 = arith.constant dense<0.000000e+00> : vector<32xf32>
    %135 = vector.multi_reduction <add>, %132, %cst_52 [0] : vector<8x32xf32> to vector<32xf32>
    %136 = vector.shape_cast %135 : vector<32xf32> to vector<1x32xf32>
    %cst_53 = arith.constant 8.000000e+00 : f32
    %137 = vector.broadcast %cst_53 : f32 to vector<1x32xf32>
    %138 = arith.divf %136, %137 : vector<1x32xf32>
    %139 = vector.broadcast %138 : vector<1x32xf32> to vector<8x32xf32>
    %140 = arith.subf %132, %139 : vector<8x32xf32>
    %141 = arith.mulf %140, %140 : vector<8x32xf32>
    %cst_54 = arith.constant dense<0.000000e+00> : vector<32xf32>
    %142 = vector.multi_reduction <add>, %141, %cst_54 [0] : vector<8x32xf32> to vector<32xf32>
    %143 = vector.shape_cast %142 : vector<32xf32> to vector<1x32xf32>
    %cst_55 = arith.constant 8.000000e+00 : f32
    %144 = vector.broadcast %cst_55 : f32 to vector<1x32xf32>
    %145 = arith.divf %143, %144 : vector<1x32xf32>
    %146 = vector.broadcast %138 : vector<1x32xf32> to vector<8x32xf32>
    %147 = arith.subf %132, %146 : vector<8x32xf32>
    %cst_56 = arith.constant 9.99999974E-6 : f32
    %148 = vector.broadcast %cst_56 : f32 to vector<1x32xf32>
    %149 = arith.addf %145, %148 : vector<1x32xf32>
    %150 = math.rsqrt %149 : vector<1x32xf32>
    %151 = vector.broadcast %150 : vector<1x32xf32> to vector<8x32xf32>
    %152 = arith.mulf %147, %151 : vector<8x32xf32>
    %153 = vector.broadcast %133 : vector<1x32xf32> to vector<8x32xf32>
    %154 = arith.mulf %152, %153 : vector<8x32xf32>
    %155 = vector.broadcast %134 : vector<1x32xf32> to vector<8x32xf32>
    %156 = arith.addf %154, %155 : vector<8x32xf32>
    %cst_57 = arith.constant 0.00999999977 : f32
    %157 = vector.broadcast %cst_57 : f32 to vector<8x32xf32>
    %158 = arith.mulf %157, %156 : vector<8x32xf32>
    %159 = arith.maximumf %156, %158 : vector<8x32xf32>
    %cst_58 = arith.constant dense<0.000000e+00> : vector<8x107xf32>
    %160 = tpu.matmul %159, %4, %cst_58 {dimension_numbers = #tpu.dot_dimension_numbers<[1], [0], [0], [1], [0, 0, 1, 1], [], []>} : vector<8x32xf32>, vector<32x107xf32>, vector<8x107xf32> -> vector<8x107xf32>
    %c13 = arith.constant 13 : index
    %c0_59 = arith.constant 0 : index
    %161 = vector.load %arg7[%c13, %c0_59] : memref<16x107xf32, #tpu.memory_space<vmem>>, vector<1x107xf32>
    %162 = vector.broadcast %161 : vector<1x107xf32> to vector<8x107xf32>
    %163 = arith.addf %160, %162 : vector<8x107xf32>
    %164 = vector.extract_strided_slice %163 {offsets = [0, 0], sizes = [8, 4], strides = [1, 1]} : vector<8x107xf32> to vector<8x4xf32>
    %cst_60 = arith.constant dense<0xFF800000> : vector<8xf32>
    %165 = vector.multi_reduction <maximumf>, %164, %cst_60 [1] : vector<8x4xf32> to vector<8xf32>
    %166 = vector.shape_cast %165 : vector<8xf32> to vector<8x1xf32>
    %167 = vector.broadcast %166 : vector<8x1xf32> to vector<8x4xf32>
    %168 = arith.subf %164, %167 : vector<8x4xf32>
    %169 = math.exp %168 : vector<8x4xf32>
    %cst_61 = arith.constant dense<0.000000e+00> : vector<8xf32>
    %170 = vector.multi_reduction <add>, %169, %cst_61 [1] : vector<8x4xf32> to vector<8xf32>
    %171 = vector.shape_cast %170 : vector<8xf32> to vector<8x1xf32>
    %172 = tpu.reciprocal %171 {approx = true} : vector<8x1xf32> -> vector<8x1xf32>
    %173 = vector.broadcast %172 : vector<8x1xf32> to vector<8x4xf32>
    %174 = arith.mulf %169, %173 : vector<8x4xf32>
    %175 = vector.extract_strided_slice %163 {offsets = [0, 4], sizes = [8, 103], strides = [1, 1]} : vector<8x107xf32> to vector<8x103xf32>
    %c0_62 = arith.constant 0 : index
    %c0_63 = arith.constant 0 : index
    %176 = vector.load %arg5[%c0_62, %c0_63] : memref<64x32xf32, #tpu.memory_space<vmem>>, vector<64x32xf32>
    %cst_64 = arith.constant dense<0.000000e+00> : vector<8x32xf32>
    %177 = tpu.matmul %128, %176, %cst_64 {dimension_numbers = #tpu.dot_dimension_numbers<[1], [0], [0], [1], [0, 0, 1, 1], [], []>} : vector<8x64xf32>, vector<64x32xf32>, vector<8x32xf32> -> vector<8x32xf32>
    %c14 = arith.constant 14 : index
    %c0_65 = arith.constant 0 : index
    %178 = vector.load %arg7[%c14, %c0_65] : memref<16x107xf32, #tpu.memory_space<vmem>>, vector<1x32xf32>
    %179 = vector.broadcast %178 : vector<1x32xf32> to vector<8x32xf32>
    %180 = arith.addf %177, %179 : vector<8x32xf32>
    %cst_66 = arith.constant 0.00999999977 : f32
    %181 = vector.broadcast %cst_66 : f32 to vector<8x32xf32>
    %182 = arith.mulf %181, %180 : vector<8x32xf32>
    %183 = arith.maximumf %180, %182 : vector<8x32xf32>
    %c0_67 = arith.constant 0 : index
    %c0_68 = arith.constant 0 : index
    %184 = vector.load %arg6[%c0_67, %c0_68] : memref<32x2xf32, #tpu.memory_space<vmem>>, vector<32x2xf32>
    %cst_69 = arith.constant dense<0.000000e+00> : vector<8x2xf32>
    %185 = tpu.matmul %183, %184, %cst_69 {dimension_numbers = #tpu.dot_dimension_numbers<[1], [0], [0], [1], [0, 0, 1, 1], [], []>} : vector<8x32xf32>, vector<32x2xf32>, vector<8x2xf32> -> vector<8x2xf32>
    %c15 = arith.constant 15 : index
    %c0_70 = arith.constant 0 : index
    %186 = vector.load %arg7[%c15, %c0_70] : memref<16x107xf32, #tpu.memory_space<vmem>>, vector<1x2xf32>
    %187 = vector.broadcast %186 : vector<1x2xf32> to vector<8x2xf32>
    %188 = arith.addf %185, %187 : vector<8x2xf32>
    %cst_71 = arith.constant 0.000000e+00 : f32
    %189 = vector.broadcast %cst_71 : f32 to vector<8x2xf32>
    %190 = arith.subf %189, %188 : vector<8x2xf32>
    %191 = math.exp %190 : vector<8x2xf32>
    %cst_72 = arith.constant 1.000000e+00 : f32
    %192 = vector.broadcast %cst_72 : f32 to vector<8x2xf32>
    %193 = arith.addf %192, %191 : vector<8x2xf32>
    %cst_73 = arith.constant 1.000000e+00 : f32
    %194 = vector.broadcast %cst_73 : f32 to vector<8x2xf32>
    %195 = arith.divf %194, %193 : vector<8x2xf32>
    %196 = tpu.concatenate %72, %90, %84, %195, %174, %175 in 1 : vector<8x8xf32>, vector<8x8xf32>, vector<8x16xf32>, vector<8x2xf32>, vector<8x4xf32>, vector<8x103xf32> -> vector<8x141xf32>
    %c0_74 = arith.constant 0 : index
    %c0_75 = arith.constant 0 : index
    %197 = vector.load %arg8[%c0_74, %c0_75] : memref<8x141xf32, #tpu.memory_space<vmem>>, vector<8x141xf32>
    tpu.vector_store %arg8[%c0_74, %c0_75], %196 {strides = array<i32>} : memref<8x141xf32, #tpu.memory_space<vmem>>, vector<8x141xf32>,
    return
  }
}

</mosaic_0001>

<bundles_post_ra>
// kernel: tpu_custom_call.1
= control target key start
LH: loop header
LB: loop body
LE: loop exit
PB: predicated region body
PF: predicated region fallthrough
CT: control target
= control target key end

     0   :  { %13 = vsyncpa [#allocation3], 0  ;;  %s1985_s0 = inlined_call_operand.hbm [shape: f32[8,107], index: 0, kind: input, shape index: {}]   ;;  %s1986_s1 = inlined_call_operand.hbm [shape: f32[8,8], index: 1, kind: input, shape index: {}]   ;;  %s1987_s2 = inlined_call_operand.hbm [shape: f32[107,32], index: 2, kind: input, shape index: {}]   ;;  %s1988_s3 = inlined_call_operand.hbm [shape: f32[32,203], index: 3, kind: input, shape index: {}]   ;;  %s1989_s4 = inlined_call_operand.hbm [shape: f32[24,96], index: 4, kind: input, shape index: {}]   ;;  %s1990_s5 = inlined_call_operand.hbm [shape: f32[64,32], index: 5, kind: input, shape index: {}]   ;;  %s1991_s6 = inlined_call_operand.hbm [shape: f32[32,2], index: 6, kind: input, shape index: {}]   ;;  %s1992_s7 = inlined_call_operand.hbm [shape: f32[16,107], index: 7, kind: input, shape index: {}]   ;;  %s1993_s8 = inlined_call_operand.hbm [shape: f32[8,141], index: 8, kind: output, shape index: {}]  }
   0x1   :  { %14 = vsyncpa [#allocation6], 0 }
   0x2   :  { %15 = vsyncpa [#allocation9], 0 }
   0x3   :  { %16 = vsyncpa [#allocation12], 0 }
   0x4   :  { %17 = vsyncpa [#allocation15], 0 }
   0x5   :  { %18 = vsyncpa [#allocation4], 0  ;;  %s1658_s27 = smov [#allocation5]   ;;  %s1659_s29 = smov [#allocation8]  }
   0x6   :  { %s35_s28 = sshll.u32 %s1658_s27, 4  ;;  %s56_s30 = sshll.u32 %s1659_s29, 4  ;;  %s36_s28 = int_to_ptr.vmem [resolvable:$true] %s35_s28  ;;  %s1726_s30 = int_to_ptr.vmem [resolvable:$true] %s56_s30 }
   0x7   :  { %s1448_s11 = scalar_lea.hbm %s1986_s1, 128 }
   0x8   :  { %p1449_p0 = scmp.ne.s32.totalorder %s1986_s1, %s1448_s11  ;;  %p1452_p1 = scmp.lt.u32.totalorder %s1448_s11, %s1986_s1 }
   0xa   :  { %p1454_p2 = pnand %p1452_p1, %p1449_p0 }
   0xc   :  { %1457 = shalt.err (!%p1454_p2)
}
   0xd   :  { %s1458_s16 = scalar_lea.vmem %s36_s28, 128  ;;  %p1463_p4 = scmp.lt.s32.totalorder %s36_s28, %s36_s28 }
   0xe   :  { %p1459_p3 = scmp.ne.s32.totalorder %s36_s28, %s1458_s16  ;;  %p1464_p5 = scmp.lt.s32.totalorder %s1458_s16, %s1458_s16 }
  0x10   :  { %p1465_p6 = por %p1464_p5, %p1463_p4 }
  0x12   :  { %p1466_p7 = pnand %p1465_p6, %p1459_p3 }
  0x14   :  { %1469 = shalt.err (!%p1466_p7)
}
  0x15   :  { %38 = dma.hbm_to_vmem [thread:$0]  %s1986_s1, 128, %s36_s28, [#allocation6]  }
  0x16   :  { %s1470_s21 = scalar_lea.hbm %s1988_s3, 1024 }
  0x17   :  { %p1471_p8 = scmp.ne.s32.totalorder %s1988_s3, %s1470_s21  ;;  %p1474_p9 = scmp.lt.u32.totalorder %s1470_s21, %s1988_s3 }
  0x19   :  { %p1476_p10 = pnand %p1474_p9, %p1471_p8 }
  0x1b   :  { %1479 = shalt.err (!%p1476_p10)
}
  0x1c   :  { %s1480_s26 = scalar_lea.vmem %s1726_s30, 1024  ;;  %p1485_p12 = scmp.lt.s32.totalorder %s1726_s30, %s1726_s30 }
  0x1d   :  { %p1481_p11 = scmp.ne.s32.totalorder %s1726_s30, %s1480_s26  ;;  %p1486_p13 = scmp.lt.s32.totalorder %s1480_s26, %s1480_s26 }
  0x1f   :  { %p1487_p0 = por %p1486_p13, %p1485_p12 }
  0x21   :  { %p1488_p1 = pnand %p1487_p0, %p1481_p11 }
  0x23   :  { %1491 = shalt.err (!%p1488_p1)
}
  0x24   :  { %s1660_s1 = smov 256   ;;  %s1661_s27 = smov 16  }
  0x25   :  { %62 = dma.hbm_to_vmem [thread:$0]  %s1988_s3, 1024, %s1726_s30, [#allocation9], %s1660_s1, %s1660_s1, %s1661_s27  }
  0x26   :  { %s1662_s9 = smov [#allocation11]   ;;  %s1663_s11 = smov [#allocation2]  }
  0x27   :  { %s80_s10 = sshll.u32 %s1662_s9, 4  ;;  %s25_s12 = sshll.u32 %s1663_s11, 4  ;;  %s81_s10 = int_to_ptr.vmem [resolvable:$true] %s80_s10  ;;  %s26_s12 = int_to_ptr.vmem [resolvable:$true] %s25_s12 }
  0x28   :  { %s1492_s15 = scalar_lea.hbm %s1990_s5, 1024 }
  0x29   :  { %p1493_p2 = scmp.ne.s32.totalorder %s1990_s5, %s1492_s15  ;;  %p1496_p3 = scmp.lt.u32.totalorder %s1492_s15, %s1990_s5 }
  0x2b   :  { %p1498_p4 = pnand %p1496_p3, %p1493_p2 }
  0x2d   :  { %1501 = shalt.err (!%p1498_p4)
}
  0x2e   :  { %s1502_s3 = scalar_lea.vmem %s81_s10, 1024  ;;  %p1507_p6 = scmp.lt.s32.totalorder %s81_s10, %s81_s10 }
  0x2f   :  { %p1503_p5 = scmp.ne.s32.totalorder %s81_s10, %s1502_s3  ;;  %p1508_p7 = scmp.lt.s32.totalorder %s1502_s3, %s1502_s3 }
  0x31   :  { %p1509_p8 = por %p1508_p7, %p1507_p6 }
  0x33   :  { %p1510_p9 = pnand %p1509_p8, %p1503_p5 }
  0x35   :  { %1513 = shalt.err (!%p1510_p9)
}
  0x36   :  { %s1664_s30 = smov 128   ;;  %s1665_s20 = smov 8  }
  0x37   :  { %86 = dma.hbm_to_vmem [thread:$0]  %s1990_s5, 1024, %s81_s10, [#allocation12], %s1664_s30, %s1664_s30, %s1665_s20  }
  0x38   :  { %s1514_s25 = scalar_lea.hbm %s1985_s0, 128 }
  0x39   :  { %p1515_p10 = scmp.ne.s32.totalorder %s1985_s0, %s1514_s25  ;;  %p1518_p11 = scmp.lt.u32.totalorder %s1514_s25, %s1985_s0 }
  0x3b   :  { %p1520_p12 = pnand %p1518_p11, %p1515_p10 }
  0x3d   :  { %1523 = shalt.err (!%p1520_p12)
}
  0x3e   :  { %s1524_s29 = scalar_lea.vmem %s26_s12, 128  ;;  %p1529_p0 = scmp.lt.s32.totalorder %s26_s12, %s26_s12 }
  0x3f   :  { %p1525_p13 = scmp.ne.s32.totalorder %s26_s12, %s1524_s29  ;;  %p1530_p1 = scmp.lt.s32.totalorder %s1524_s29, %s1524_s29 }
  0x41   :  { %p1531_p2 = por %p1530_p1, %p1529_p0 }
  0x43   :  { %p1532_p3 = pnand %p1531_p2, %p1525_p13 }
  0x45   :  { %1535 = shalt.err (!%p1532_p3)
}
  0x46   :  { %28 = dma.hbm_to_vmem [thread:$0]  %s1985_s0, 128, %s26_s12, [#allocation3]  }
  0x47   :  { %s1666_s10 = smov [#allocation7]   ;;  %s1667_s13 = smov [#allocation10]  }
  0x48   :  { %s44_s11 = sshll.u32 %s1666_s10, 4  ;;  %s68_s14 = sshll.u32 %s1667_s13, 4  ;;  %s45_s11 = int_to_ptr.vmem [resolvable:$true] %s44_s11  ;;  %s1784_s14 = int_to_ptr.vmem [resolvable:$true] %s68_s14 }
  0x49   :  { %s1536_s17 = scalar_lea.hbm %s1987_s2, 1792 }
  0x4a   :  { %p1537_p4 = scmp.ne.s32.totalorder %s1987_s2, %s1536_s17  ;;  %p1540_p5 = scmp.lt.u32.totalorder %s1536_s17, %s1987_s2 }
  0x4c   :  { %p1542_p6 = pnand %p1540_p5, %p1537_p4 }
  0x4e   :  { %1545 = shalt.err (!%p1542_p6)
}
  0x4f   :  { %s1546_s0 = scalar_lea.vmem %s45_s11, 1792  ;;  %p1551_p8 = scmp.lt.s32.totalorder %s45_s11, %s45_s11 }
  0x50   :  { %p1547_p7 = scmp.ne.s32.totalorder %s45_s11, %s1546_s0  ;;  %p1552_p9 = scmp.lt.s32.totalorder %s1546_s0, %s1546_s0 }
  0x52   :  { %p1553_p10 = por %p1552_p9, %p1551_p8 }
  0x54   :  { %p1554_p11 = pnand %p1553_p10, %p1547_p7 }
  0x56   :  { %1557 = shalt.err (!%p1554_p11)
}
  0x57   :  { %50 = dma.hbm_to_vmem [thread:$0]  %s1987_s2, 1792, %s45_s11, [#allocation6], %s1664_s30, %s1664_s30, %s1665_s20  }
  0x58   :  { %s1558_s25 = scalar_lea.hbm %s1989_s4, 384 }
  0x59   :  { %p1559_p12 = scmp.ne.s32.totalorder %s1989_s4, %s1558_s25  ;;  %p1562_p13 = scmp.lt.u32.totalorder %s1558_s25, %s1989_s4 }
  0x5b   :  { %p1564_p0 = pnand %p1562_p13, %p1559_p12 }
  0x5d   :  { %1567 = shalt.err (!%p1564_p0)
}
  0x5e   :  { %s1568_s29 = scalar_lea.vmem %s1784_s14, 384  ;;  %p1573_p2 = scmp.lt.s32.totalorder %s1784_s14, %s1784_s14 }
  0x5f   :  { %p1569_p1 = scmp.ne.s32.totalorder %s1784_s14, %s1568_s29  ;;  %p1574_p3 = scmp.lt.s32.totalorder %s1568_s29, %s1568_s29 }
  0x61   :  { %p1575_p4 = por %p1574_p3, %p1573_p2 }
  0x63   :  { %p1576_p5 = pnand %p1575_p4, %p1569_p1 }
  0x65   :  { %1579 = shalt.err (!%p1576_p5)
}
  0x66   :  { %74 = dma.hbm_to_vmem [thread:$0]  %s1989_s4, 384, %s1784_s14, [#allocation9], %s1664_s30, %s1664_s30, %s1665_s20  }
  0x67   :  { %s1668_s9 = smov [#allocation13]   ;;  %s1669_s11 = smov [#allocation14]  }
  0x68   :  { %s92_s10 = sshll.u32 %s1668_s9, 4  ;;  %s104_s13 = sshll.u32 %s1669_s11, 4  ;;  %s93_s10 = int_to_ptr.vmem [resolvable:$true] %s92_s10  ;;  %s1821_s13 = int_to_ptr.vmem [resolvable:$true] %s104_s13 }
  0x69   :  { %s1580_s17 = scalar_lea.hbm %s1991_s6, 512 }
  0x6a   :  { %p1581_p6 = scmp.ne.s32.totalorder %s1991_s6, %s1580_s17  ;;  %p1584_p7 = scmp.lt.u32.totalorder %s1580_s17, %s1991_s6 }
  0x6c   :  { %p1586_p8 = pnand %p1584_p7, %p1581_p6 }
  0x6e   :  { %1589 = shalt.err (!%p1586_p8)
}
  0x6f   :  { %s1590_s4 = scalar_lea.vmem %s93_s10, 512  ;;  %p1595_p10 = scmp.lt.s32.totalorder %s93_s10, %s93_s10 }
  0x70   :  { %p1591_p9 = scmp.ne.s32.totalorder %s93_s10, %s1590_s4  ;;  %p1596_p11 = scmp.lt.s32.totalorder %s1590_s4, %s1590_s4 }
  0x72   :  { %p1597_p12 = por %p1596_p11, %p1595_p10 }
  0x74   :  { %p1598_p13 = pnand %p1597_p12, %p1591_p9 }
  0x76   :  { %1601 = shalt.err (!%p1598_p13)
}
  0x77   :  { %98 = dma.hbm_to_vmem [thread:$0]  %s1991_s6, 512, %s93_s10, [#allocation12], %s1664_s30, %s1664_s30, %s1665_s20  }
  0x78   :  { %s1602_s23 = scalar_lea.hbm %s1992_s7, 256 }
  0x79   :  { %p1603_p0 = scmp.ne.s32.totalorder %s1992_s7, %s1602_s23  ;;  %p1606_p1 = scmp.lt.u32.totalorder %s1602_s23, %s1992_s7 }
  0x7b   :  { %p1608_p2 = pnand %p1606_p1, %p1603_p0 }
  0x7d   :  { %1611 = shalt.err (!%p1608_p2)
}
  0x7e   :  { %s1612_s27 = scalar_lea.vmem %s1821_s13, 256  ;;  %p1617_p4 = scmp.lt.s32.totalorder %s1821_s13, %s1821_s13 }
  0x7f   :  { %p1613_p3 = scmp.ne.s32.totalorder %s1821_s13, %s1612_s27  ;;  %p1618_p5 = scmp.lt.s32.totalorder %s1612_s27, %s1612_s27 }
  0x81   :  { %p1619_p6 = por %p1618_p5, %p1617_p4 }
  0x83   :  { %p1620_p7 = pnand %p1619_p6, %p1613_p3 }
  0x85   :  { %1623 = shalt.err (!%p1620_p7)
}
  0x86   :  { %110 = dma.hbm_to_vmem [thread:$0]  %s1992_s7, 256, %s1821_s13, [#allocation15], %s1664_s30, %s1664_s30, %s1665_s20  }
  0x87   :  { %1646 = dma.done.wait [#allocation3], 128  }
  0x88   :  { %1647 = vsyncadd [#allocation3], 4294967168 }
  0x89   :  { %1648 = dma.done.wait [#allocation6], 1920  }
  0x8a   :  { %1649 = vsyncadd [#allocation6], 4294965376 }
  0x8b   :  { %1650 = dma.done.wait [#allocation9], 1408  }
  0x8c   :  { %1651 = vsyncadd [#allocation9], 4294965888 }
  0x8d   :  { %1652 = dma.done.wait [#allocation12], 1536  }
  0x8e   :  { %1653 = vsyncadd [#allocation12], 4294965760 }
  0x8f   :  { %1654 = dma.done.wait [#allocation15], 256  }
  0x90   :  { %1655 = vsyncadd [#allocation15], 4294967040  ;;  %v1670_v0 = vmov 0.0|0.0   ;;  %vm1671_vm0 = vmmov 0   ;;  %v1672_v1 = vmov 0.0   ;;  %v144_v2 = vld [vmem:[#allocation7] sm:$0xff] }
  0x91   :  { %1296 = vmatprep.subr.bf16.mxu0 %v1670_v0  ;;  %1318 = vmatprep.subr.bf16.mxu1 %v1670_v0  ;;  %v145_v3 = vld [vmem:[#allocation7 + $0x8] sm:$0xff]  ;;  %v146_v4 = vld [vmem:[#allocation7 + $0x10] sm:$0xff]  ;;  %v147_v6 = vld [vmem:[#allocation7 + $0x18] sm:$0xff]  ;;  %vm167_vm1 = vcmask 1042432   ;;  %vm1673_vm2 = vmmov 1   ;;  %vm163_vm4 = vcmask 875520  }
  0x92   :  { %1210 = vmatprep.mubr.msk.f32.mxu0 %vm1671_vm0, %v1672_v1  ;;  %1221 = vmatprep.mubr.msk.f32.mxu1 %vm1671_vm0, %v1672_v1  ;;  %v1297_v5 = vpack.c.bf16 %v145_v3, %v144_v2  ;;  %v1300_v7 = vpack.c.bf16 %v147_v6, %v146_v4  ;;  %v148_v8 = vld [vmem:[#allocation7 + $0x20] sm:$0xff]  ;;  %v149_v9 = vld [vmem:[#allocation7 + $0x28] sm:$0xff]  ;;  %v150_v11 = vld [vmem:[#allocation7 + $0x30] sm:$0xff]  ;;  %s1674_s7 = smov 96   ;;  %vm243_vm5 = vcmask 261120   ;;  %vm485_vm6 = vcmask 261248  }
  0x93   :  { %v1303_v10 = vpack.c.bf16 %v149_v9, %v148_v8  ;;  %v151_v12 = vld [vmem:[#allocation7 + $0x38] sm:$0xff]  ;;  %v152_v14 = vld [vmem:[#allocation7 + $0x40] sm:$0xff]  ;;  %v153_v15 = vld [vmem:[#allocation7 + $0x48] sm:$0xff]  ;;  %s1675_s30 = smov 112   ;;  %s1676_s29 = smov 120   ;;  %vm496_vm7 = vcmask 130048  }
  0x94   :  { %1298 = vmatpush3.bf16.msra.mxu0 %v1297_v5  ;;  %v1306_v13 = vpack.c.bf16 %v151_v12, %v150_v11  ;;  %v1309_v16 = vpack.c.bf16 %v153_v15, %v152_v14  ;;  %v154_v17 = vld [vmem:[#allocation7 + $0x50] sm:$0xff]  ;;  %v155_v18 = vld [vmem:[#allocation7 + $0x58] sm:$0xff]  ;;  %v156_v20 = vld [vmem:[#allocation7 + $0x60] sm:$0xff]  ;;  %s1677_s2 = smov 64   ;;  %vm516_vm8 = vcmask 64512   ;;  %vm526_vm9 = vcmask 195584  }
  0x95   :  { %1299 = vmatprep.subr.bf16.mxu0 %v1670_v0  ;;  %v1312_v19 = vpack.c.bf16 %v155_v18, %v154_v17  ;;  %v157_v21 = vld [vmem:[#allocation7 + $0x68] sm:$0x7]  ;;  %vm1316_vm3 = vmpackc.low %vm167_vm1, %vm1673_vm2  ;;  %v135_v23 = vld [vmem:[#allocation2] sm:$0xff]  ;;  %s1678_s5 = smov 32   ;;  %vm896_vm10 = vcmask 523264   ;;  %vm868_vm11 = vcmask 31744  }
  0x96   :  { %v1315_v22 = vpack.c.bf16 %v157_v21, %v156_v20  ;;  %v1873_v24 = vld [vmem:[#allocation8] sm:$0xff]  ;;  %v1875_v25 = vld [vmem:[#allocation8 + $0x10] sm:$0xff]  ;;  %v1104_v32 = vld [vmem:[#allocation14] ss:$0 sm:$0xff]  ;;  %vm1078_vm12 = vcmask 277504   ;;  %s1680_s9 = smov [#allocation16]  }
  0x97   :  { %v1319_v26 = vpack.c.bf16 %v1875_v25, %v1873_v24  ;;  %v1880_v27 = vld [vmem:[#allocation8 + $0x20] sm:$0xff]  ;;  %v1882_v28 = vld [vmem:[#allocation8 + $0x30] sm:$0xff]  ;;  %v1889_v30 = vpack.i.bf16 %v1875_v25, %v1873_v24  ;;  %v1107_v56 = vld [vmem:[#allocation14 + $0x1] ss:$0 sm:$0xff]  ;;  %s1091_s10 = sshll.u32 %s1680_s9, 4  ;;  %vm1080_vm13 = vcmask 310272   ;;  %s1092_s10 = int_to_ptr.vmem [resolvable:$true] %s1091_s10 }
  0x98   :  { %1301 = vmatpush3.bf16.msra.mxu0 %v1300_v7  ;;  %v1322_v29 = vpack.c.bf16 %v1882_v28, %v1880_v27  ;;  %v1895_v31 = vpack.i.bf16 %v1882_v28, %v1880_v27  ;;  %v1108_v58 = vld [vmem:[#allocation14 + $0x2] ss:$0 sm:$0xff]  ;;  %v1109_v9 = vld [vmem:[#allocation14 + $0x3] ss:$0 sm:$0xff]  ;;  %vm1083_vm14 = vcmask 105472   ;;  %s1624_s11 = scalar_lea.vmem %s1092_s10, 256  ;;  %p1629_p9 = scmp.lt.s32.totalorder %s1092_s10, %s1092_s10 }
  0x99   :  { %1302 = vmatprep.subr.bf16.mxu0 %v1670_v0  ;;  %1320 = vmatpush3.bf16.msra.mxu1 %v1319_v26  ;;  %p1625_p8 = scmp.ne.s32.totalorder %s1092_s10, %s1624_s11  ;;  %p1630_p10 = scmp.lt.s32.totalorder %s1624_s11, %s1624_s11 }
  0x9a   :  { %1321 = vmatprep.subr.bf16.mxu1 %v1670_v0  ;;  %1387 = vrot.lane.b32.xlu0 %v1889_v30, %s1674_s7 }
  0x9b   :  { %p1631_p11 = por %p1630_p10, %p1629_p9 }
  0x9c   :  { %1304 = vmatpush3.bf16.msra.mxu0 %v1303_v10 }
  0x9d   :  { %1305 = vmatprep.subr.bf16.mxu0 %v1670_v0  ;;  %1323 = vmatpush3.bf16.msra.mxu1 %v1322_v29  ;;  %p1632_p12 = pnand %p1631_p11, %p1625_p8 }
  0x9e   :  { %1324 = vmatprep.subr.bf16.mxu1 %v1670_v0  ;;  %1392 = vrot.lane.b32.xlu0 %v1895_v31, %s1674_s7 }
  0xa0   :  { %1307 = vmatpush3.bf16.msra.mxu0 %v1306_v13 }
  0xa1   :  { %1308 = vmatprep.subr.bf16.mxu0 %v1670_v0 }
  0xa4   :  { %1310 = vmatpush3.bf16.msra.mxu0 %v1309_v16 }
  0xa5   :  { %1311 = vmatprep.subr.bf16.mxu0 %v1670_v0 }
  0xa8   :  { %1313 = vmatpush3.bf16.msra.mxu0 %v1312_v19 }
  0xa9   :  { %1314 = vmatprep.subr.bf16.mxu0 %v1670_v0 }
  0xac   :  { %1317 = vmatpush3.bf16.msk.msra.mxu0 %vm1316_vm3, %v1315_v22 }
  0xad   :  { %1339 = vmatprep.subr.bf16.mxu0 %v1670_v0 }
  0xaf   :  { %1211 = vmatmul.mubr.msk.f32.vlgmr.msra.gmra.mrb[0].mxu0 %vm163_vm4, %v135_v23 }
  0xb0   :  { %1263 = vmatprep.mubr.msk.f32.mxu0 %vm1671_vm0, %v1672_v1 }
 0x10c   :  { %v1388_v63 = vpop.permute.xlu0 %1387 }
 0x10d   :  { %v1390_v2 = vunpack.i.h.bf16 %v1388_v63  ;;  %v1389_v3 = vunpack.i.l.bf16 %v1388_v63  ;;  %v520_v63 = vld [vmem:[#allocation10 + $0x10] sm:$0xff] }
 0x10f   :  { %v1325_v4 = vpack.c.bf16 %v1390_v2, %v1389_v3 }
 0x110   :  { %v1393_v5 = vpop.permute.xlu0 %1392 }
 0x111   :  { %v1395_v6 = vunpack.i.h.bf16 %v1393_v5  ;;  %v1394_v7 = vunpack.i.l.bf16 %v1393_v5  ;;  %v502_v5 = vld [vmem:[#allocation5] sm:$0xff] }
 0x113   :  { %v1328_v8 = vpack.c.bf16 %v1395_v6, %v1394_v7 }
 0x182   :  { %v237_v33 = vpop.f32.mrb[0].mxu0 }
 0x183   :  { %v238_v34 = vadd.f32 %v1104_v32, %v237_v33  ;;  %v1212_v35 = vpop.f32.mrb[1].mxu0 }
 0x185   :  { %v244_v36 = vsel %vm243_vm5, %v238_v34, 0.0 }
 0x186   :  { %v245_v37 = vrot.slane %v244_v36, 4 }
 0x188   :  { %v246_v38 = vadd.f32 %v245_v37, %v244_v36 }
 0x18a   :  { %v247_v39 = vrot.slane %v246_v38, 2 }
 0x18c   :  { %v248_v40 = vadd.f32 %v247_v39, %v246_v38  ;;  %v1111_v39 = vld [vmem:[#allocation14 + $0x4] ss:$0 sm:$0xff] }
 0x18e   :  { %v249_v41 = vrot.slane %v248_v40, 1 }
 0x190   :  { %v250_v42 = vadd.f32 %v249_v41, %v248_v40  ;;  %v1112_v41 = vld [vmem:[#allocation14 + $0x5] ss:$0 sm:$0xff] }
 0x192   :  { %v252_v43 = vmul.f32 0.125, %v250_v42 }
 0x194   :  { %v253_v44 = vsub.f32 %v238_v34, %v252_v43 }
 0x196   :  { %v254_v45 = vmul.f32 %v253_v44, %v253_v44 }
 0x198   :  { %v255_v46 = vsel %vm243_vm5, %v254_v45, 0.0 }
 0x199   :  { %v256_v47 = vrot.slane %v255_v46, 4 }
 0x19b   :  { %v257_v48 = vadd.f32 %v256_v47, %v255_v46  ;;  %v1113_v46 = vld [vmem:[#allocation14 + $0x6] ss:$0 sm:$0xff] }
 0x19d   :  { %v258_v49 = vrot.slane %v257_v48, 2 }
 0x19f   :  { %v259_v50 = vadd.f32 %v258_v49, %v257_v48 }
 0x1a1   :  { %v260_v51 = vrot.slane %v259_v50, 1 }
 0x1a3   :  { %v261_v52 = vadd.f32 %v260_v51, %v259_v50 }
 0x1a5   :  { %v262_v53 = vmul.f32 0.125, %v261_v52 }
 0x1a7   :  { %v263_v54 = vadd.f32 1e-05, %v262_v53 }
 0x1a9   :  { %1426 = vrsqrt.f32 %v263_v54 }
 0x1b3   :  { %v1427_v55 = vpop.eup %1426 }
 0x1b4   :  { %v265_v57 = vmul.f32 %v1427_v55, %v253_v44 }
 0x1b6   :  { %v270_v59 = vmul.f32 %v1107_v56, %v265_v57 }
 0x1b8   :  { %v275_v60 = vadd.f32 %v1108_v58, %v270_v59 }
 0x1ba   :  { %v276_v61 = vmul.f32 0.01, %v275_v60 }
 0x1bc   :  { %v277_v62 = vmax.f32 %v275_v60, %v276_v61  ;;  %v518_v60 = vld [vmem:[#allocation10] sm:$0xff]  ;;  %v519_v61 = vld [vmem:[#allocation10 + $0x8] sm:$0xff] }
 0x1be   :  { %1222 = vmatmul.mubr.msk.f32.vlgmr.msra.gmra.mrb[0].mxu1 %vm243_vm5, %v277_v62  ;;  %v1331_v62 = vpack.c.bf16 %v519_v61, %v518_v60  ;;  %v881_v60 = vld [vmem:[#allocation11 + $0x8] sm:$0xff] }
 0x1bf   :  { %1232 = vmatprep.mubr.msk.f32.mxu1 %vm1671_vm0, %v1672_v1  ;;  %1326 = vmatpush3.bf16.msra.mxu1 %v1325_v4 }
 0x1c0   :  { %1327 = vmatprep.subr.bf16.mxu1 %v1670_v0 }
 0x1c3   :  { %1329 = vmatpush3.bf16.msra.mxu1 %v1328_v8 }
 0x1c4   :  { %1330 = vmatprep.subr.bf16.mxu1 %v1670_v0 }
 0x291   :  { %v352_v10 = vpop.f32.mrb[0].mxu1 }
 0x292   :  { %v353_v11 = vadd.f32 %v1109_v9, %v352_v10  ;;  %v1223_v12 = vpop.f32.mrb[1].mxu1 }
 0x294   :  { %v358_v13 = vsel %vm243_vm5, %v353_v11, 0.0 }
 0x295   :  { %v359_v14 = vrot.slane %v358_v13, 4 }
 0x297   :  { %v360_v15 = vadd.f32 %v359_v14, %v358_v13 }
 0x299   :  { %v361_v16 = vrot.slane %v360_v15, 2 }
 0x29b   :  { %v362_v17 = vadd.f32 %v361_v16, %v360_v15 }
 0x29d   :  { %v363_v18 = vrot.slane %v362_v17, 1 }
 0x29f   :  { %v364_v19 = vadd.f32 %v363_v18, %v362_v17  ;;  %v140_v17 = vld [vmem:[#allocation8 + $0x8] sm:$0xff] }
 0x2a0   :  { %v1406_v18 = vpack.i.bf16 %v140_v17, %v1873_v24  ;;  %v142_v24 = vld [vmem:[#allocation8 + $0x28] sm:$0xff] }
 0x2a1   :  { %v365_v20 = vmul.f32 0.125, %v364_v19  ;;  %v1115_v19 = vld [vmem:[#allocation14 + $0x7] ss:$0 sm:$0xff] }
 0x2a3   :  { %v366_v21 = vsub.f32 %v353_v11, %v365_v20 }
 0x2a5   :  { %v367_v22 = vmul.f32 %v366_v21, %v366_v21 }
 0x2a7   :  { %v368_v23 = vsel %vm243_vm5, %v367_v22, 0.0 }
 0x2a8   :  { %v369_v26 = vrot.slane %v368_v23, 4 }
 0x2aa   :  { %v370_v29 = vadd.f32 %v369_v26, %v368_v23 }
 0x2ac   :  { %v371_v32 = vrot.slane %v370_v29, 2 }
 0x2ae   :  { %v372_v33 = vadd.f32 %v371_v32, %v370_v29  ;;  %v141_v32 = vld [vmem:[#allocation8 + $0x18] sm:$0xff] }
 0x2b0   :  { %v373_v34 = vrot.slane %v372_v33, 1 }
 0x2b2   :  { %v374_v35 = vadd.f32 %v373_v34, %v372_v33 }
 0x2b4   :  { %v375_v36 = vmul.f32 0.125, %v374_v35  ;;  %v1411_v35 = vpack.i.bf16 %v141_v32, %v1875_v25 }
 0x2b6   :  { %v376_v37 = vadd.f32 1e-05, %v375_v36 }
 0x2b8   :  { %1428 = vrsqrt.f32 %v376_v37 }
 0x2c2   :  { %v1429_v38 = vpop.eup %1428 }
 0x2c3   :  { %v378_v40 = vmul.f32 %v1429_v38, %v366_v21  ;;  %v1416_v38 = vpack.i.bf16 %v142_v24, %v1880_v27 }
 0x2c5   :  { %v383_v42 = vmul.f32 %v1111_v39, %v378_v40  ;;  %v143_v40 = vld [vmem:[#allocation8 + $0x38] sm:$0xff] }
 0x2c7   :  { %v388_v43 = vadd.f32 %v1112_v41, %v383_v42  ;;  %v1421_v42 = vpack.i.bf16 %v143_v40, %v1882_v28  ;;  %v1118_v28 = vld [vmem:[#allocation14 + $0x9] ss:$0 sm:$0xff] }
 0x2c9   :  { %v389_v44 = vmul.f32 0.01, %v388_v43 }
 0x2cb   :  { %v390_v45 = vmax.f32 %v388_v43, %v389_v44 }
 0x2cd   :  { %1233 = vmatmul.mubr.msk.f32.vlgmr.msra.gmra.mrb[2].mxu1 %vm243_vm5, %v390_v45 }
 0x2ce   :  { %1241 = vmatprep.mubr.msk.f32.mxu1 %vm1671_vm0, %v1672_v1  ;;  %1332 = vmatpush3.bf16.msra.mxu1 %v1331_v62 }
 0x2cf   :  { %1239 = vmatprep.subr.mxu1 %v1672_v1 }
 0x2d2   :  { %1240 = vmatpush3.msra.mxu1 %v520_v63 }
 0x2d3   :  { %1333 = vmatprep.subr.bf16.mxu1 %v1670_v0 }
 0x3a0   :  { %v481_v47 = vpop.f32.mrb[2].mxu1 }
 0x3a1   :  { %v1911_v48 = vadd.f32 %v1113_v46, %v481_v47  ;;  %v1234_v49 = vpop.f32.mrb[3].mxu1 }
 0x3a3   :  { %v486_v50 = vsel %vm485_vm6, %v1911_v48, -inf  ;;  %v503_v52 = vmul.f32 0.5, %v1911_v48 }
 0x3a4   :  { %487 = vmax.xlane.f32.xlu1 %v486_v50 }
 0x3a5   :  { %v504_v55 = vmul.f32 1.442695, %v503_v52 }
 0x431   :  { %v488_v51 = vpop.xlane.xlu1 %487 }
 0x432   :  { %v489_v53 = vsub.f32 %v1911_v48, %v488_v51 }
 0x434   :  { %v490_v54 = vmul.f32 1.442695, %v489_v53 }
 0x436   :  { %1430 = vpow2.f32 %v490_v54 }
 0x437   :  { %1432 = vpow2.f32 %v504_v55  ;;  %v1117_v55 = vld [vmem:[#allocation14 + $0x8] ss:$0 sm:$0xff] }
 0x440   :  { %v1431_v56 = vpop.eup %1430 }
 0x441   :  { %493 = vrot.lane.b32.xlu1 %v1431_v56, %s1675_s30  ;;  %v1433_v57 = vpop.eup %1432 }
 0x445   :  { %507 = vrot.lane.b32.xlu1 %v1433_v57, %s1676_s29 }
 0x4b3   :  { %v494_v58 = vpop.permute.xlu1 %493 }
 0x4b4   :  { %v497_v59 = vsel %vm496_vm7, %v494_v58, 0.0 }
 0x4b5   :  { %498 = vadd.xlane.f32.xlu0 %v497_v59  ;;  %v880_v59 = vld [vmem:[#allocation11] sm:$0xff] }
 0x4b6   :  { %v1346_v62 = vpack.c.bf16 %v881_v60, %v880_v59  ;;  %v1122_v59 = vld [vmem:[#allocation14 + $0xc] ss:$0 sm:$0xff] }
 0x4b7   :  { %v508_v6 = vpop.permute.xlu1 %507 }
 0x4b8   :  { %v510_v7 = vmul.f32 %v508_v6, %v502_v5  ;;  %v884_v6 = vld [vmem:[#allocation11 + $0x20] sm:$0xff] }
 0x4ba   :  { %v1925_v8 = vadd.f32 %v510_v7, %v1911_v48  ;;  %v885_v7 = vld [vmem:[#allocation11 + $0x28] sm:$0xff] }
 0x4cb   :  { %1407 = vrot.lane.b32.xlu0 %v1406_v18, %s1678_s5 }
 0x542   :  { %v499_v2 = vpop.xlane.xlu0 %498 }
 0x543   :  { %1434 = vrcp.f32 %v499_v2  ;;  %v882_v2 = vld [vmem:[#allocation11 + $0x10] sm:$0xff] }
 0x54d   :  { %v1435_v3 = vpop.eup %1434 }
 0x54e   :  { %v1919_v4 = vmul.f32 %v1435_v3, %v1431_v56  ;;  %v883_v3 = vld [vmem:[#allocation11 + $0x18] sm:$0xff] }
 0x54f   :  { %v1349_v5 = vpack.c.bf16 %v883_v3, %v882_v2 }
 0x550   :  { %513 = vrot.lane.b32.xlu1 %v1919_v4, %s1676_s29 }
 0x554   :  { %1397 = vrot.lane.b32.xlu1 %v1889_v30, %s1677_s2 }
 0x558   :  { %1402 = vrot.lane.b32.xlu1 %v1895_v31, %s1677_s2 }
 0x5c2   :  { %v514_v9 = vpop.permute.xlu1 %513 }
 0x5c3   :  { %v517_v10 = vsel %vm516_vm8, %v1925_v8, %v514_v9  ;;  %v1352_v9 = vpack.c.bf16 %v885_v7, %v884_v6  ;;  %v973_v6 = vld [vmem:[#allocation13 + $0x10] sm:$0xff]  ;;  %v974_v7 = vld [vmem:[#allocation13 + $0x18] sm:$0xff] }
 0x5c4   :  { %1242 = vmatmul.mubr.msk.f32.vlgmr.msra.gmra.mrb[4].mxu1 %vm526_vm9, %v517_v10  ;;  %v886_v10 = vld [vmem:[#allocation11 + $0x30] sm:$0xff] }
 0x5c5   :  { %1252 = vmatprep.mubr.msk.f32.mxu1 %vm1671_vm0, %v1672_v1 }
 0x5c6   :  { %v1398_v11 = vpop.permute.xlu1 %1397 }
 0x5c7   :  { %v1400_v30 = vunpack.i.h.bf16 %v1398_v11  ;;  %v1399_v12 = vunpack.i.l.bf16 %v1398_v11  ;;  %v887_v11 = vld [vmem:[#allocation11 + $0x38] sm:$0xff] }
 0x5c9   :  { %v1334_v31 = vpack.c.bf16 %v1400_v30, %v1399_v12  ;;  %v1355_v30 = vpack.c.bf16 %v887_v11, %v886_v10  ;;  %v1361_v10 = vpack.c.bf16 %v974_v7, %v973_v6 }
 0x5ca   :  { %v1403_v13 = vpop.permute.xlu1 %1402 }
 0x5cb   :  { %v1405_v14 = vunpack.i.h.bf16 %v1403_v13  ;;  %v1404_v15 = vunpack.i.l.bf16 %v1403_v13  ;;  %1335 = vmatpush3.bf16.msra.mxu1 %v1334_v31  ;;  %v1408_v13 = vpop.permute.xlu0 %1407 }
 0x5cc   :  { %1336 = vmatprep.subr.bf16.mxu1 %v1670_v0  ;;  %v1410_v17 = vunpack.i.h.bf16 %v1408_v13  ;;  %v1409_v18 = vunpack.i.l.bf16 %v1408_v13 }
 0x5cd   :  { %v1337_v16 = vpack.c.bf16 %v1405_v14, %v1404_v15 }
 0x5cf   :  { %1338 = vmatpush3.bf16.msra.mxu1 %v1337_v16 }
 0x5d0   :  { %1345 = vmatprep.subr.bf16.mxu1 %v1670_v0 }
 0x697   :  { %v596_v20 = vpop.f32.mrb[4].mxu1 }
 0x698   :  { %v597_v21 = vadd.f32 %v1115_v19, %v596_v20  ;;  %v1243_v22 = vpop.f32.mrb[5].mxu1  ;;  %v787_v20 = vsel %vm243_vm5, %v1409_v18, %v1410_v17 }
 0x69a   :  { %v602_v23 = vsel %vm243_vm5, %v597_v21, 0.0  ;;  %v635_v26 = vmul.f32 0.01, %v597_v21 }
 0x69b   :  { %v603_v29 = vrot.slane %v602_v23, 4 }
 0x69c   :  { %v636_v33 = vmax.f32 %v597_v21, %v635_v26 }
 0x69d   :  { %v604_v34 = vadd.f32 %v603_v29, %v602_v23 }
 0x69e   :  { %894 = vrot.lane.b32.xlu1 %v636_v33, %s1674_s7 }
 0x69f   :  { %v605_v36 = vrot.slane %v604_v34, 2 }
 0x6a1   :  { %v606_v37 = vadd.f32 %v605_v36, %v604_v34  ;;  %v1119_v36 = vld [vmem:[#allocation14 + $0xa] ss:$0 sm:$0xff] }
 0x6a2   :  { %1412 = vrot.lane.b32.xlu1 %v1411_v35, %s1678_s5 }
 0x6a3   :  { %v607_v39 = vrot.slane %v606_v37, 1 }
 0x6a5   :  { %v608_v41 = vadd.f32 %v607_v39, %v606_v37 }
 0x6a6   :  { %1417 = vrot.lane.b32.xlu1 %v1416_v38, %s1678_s5 }
 0x6a7   :  { %v609_v43 = vmul.f32 0.125, %v608_v41 }
 0x6a9   :  { %v610_v44 = vsub.f32 %v597_v21, %v609_v43 }
 0x6aa   :  { %1422 = vrot.lane.b32.xlu1 %v1421_v42, %s1678_s5 }
 0x6ab   :  { %v611_v45 = vmul.f32 %v610_v44, %v610_v44 }
 0x6ad   :  { %v612_v25 = vsel %vm243_vm5, %v611_v45, 0.0 }
 0x6ae   :  { %v613_v46 = vrot.slane %v612_v25, 4 }
 0x6b0   :  { %v614_v47 = vadd.f32 %v613_v46, %v612_v25 }
 0x6b2   :  { %v615_v49 = vrot.slane %v614_v47, 2 }
 0x6b4   :  { %v616_v50 = vadd.f32 %v615_v49, %v614_v47 }
 0x6b6   :  { %v617_v51 = vrot.slane %v616_v50, 1 }
 0x6b8   :  { %v618_v27 = vadd.f32 %v617_v51, %v616_v50 }
 0x6ba   :  { %v619_v52 = vmul.f32 0.125, %v618_v27 }
 0x6bc   :  { %v620_v53 = vadd.f32 1e-05, %v619_v52 }
 0x6be   :  { %1436 = vrsqrt.f32 %v620_v53 }
 0x6c8   :  { %v1437_v54 = vpop.eup %1436 }
 0x6c9   :  { %v622_v56 = vmul.f32 %v1437_v54, %v610_v44 }
 0x6cb   :  { %v627_v57 = vmul.f32 %v1117_v55, %v622_v56 }
 0x6cd   :  { %v632_v58 = vadd.f32 %v1118_v28, %v627_v57  ;;  %v1121_v57 = vld [vmem:[#allocation14 + $0xb] ss:$0 sm:$0xff] }
 0x6cf   :  { %v633_v61 = vmul.f32 0.01, %v632_v58 }
 0x6d1   :  { %v634_v63 = vmax.f32 %v632_v58, %v633_v61 }
 0x6d3   :  { %1253 = vmatmul.mubr.msk.f32.vlgmr.msra.gmra.mrb[6].mxu1 %vm243_vm5, %v634_v63  ;;  %v972_v63 = vld [vmem:[#allocation13 + $0x8] sm:$0xff] }
 0x6d4   :  { %1347 = vmatpush3.bf16.msra.mxu1 %v1346_v62  ;;  %1282 = vmatprep.mubr.msk.f32.mxu1 %vm1671_vm0, %v1672_v1  ;;  %v971_v62 = vld [vmem:[#allocation13] sm:$0xff] }
 0x6d5   :  { %1348 = vmatprep.subr.bf16.mxu1 %v1670_v0  ;;  %v1358_v3 = vpack.c.bf16 %v972_v63, %v971_v62 }
 0x6d8   :  { %1350 = vmatpush3.bf16.msra.mxu1 %v1349_v5 }
 0x6d9   :  { %1351 = vmatprep.subr.bf16.mxu1 %v1670_v0 }
 0x6dc   :  { %1353 = vmatpush3.bf16.msra.mxu1 %v1352_v9  ;;  %v1125_v9 = vld [vmem:[#allocation14 + $0xe] ss:$0 sm:$0xff] }
 0x6dd   :  { %1354 = vmatprep.subr.bf16.mxu1 %v1670_v0 }
 0x6e0   :  { %1356 = vmatpush3.bf16.msra.mxu1 %v1355_v30 }
 0x710   :  { %v895_v12 = vpop.permute.xlu1 %894 }
 0x711   :  { %1283 = vmatmul.mubr.msk.f32.vlgmr.msra.gmra.mrb[8].mxu1 %vm896_vm10, %v895_v12 }
 0x714   :  { %v1413_v31 = vpop.permute.xlu1 %1412 }
 0x715   :  { %v1415_v15 = vunpack.i.h.bf16 %v1413_v31  ;;  %v1414_v16 = vunpack.i.l.bf16 %v1413_v31 }
 0x717   :  { %v788_v19 = vsel %vm243_vm5, %v1414_v16, %v1415_v15 }
 0x718   :  { %v1418_v14 = vpop.permute.xlu1 %1417  ;;  %v1340_v21 = vpack.c.bf16 %v788_v19, %v787_v20 }
 0x719   :  { %v1420_v23 = vunpack.i.h.bf16 %v1418_v14  ;;  %v1419_v26 = vunpack.i.l.bf16 %v1418_v14  ;;  %v1123_v14 = vld [vmem:[#allocation14 + $0xd] ss:$0 sm:$0xff] }
 0x71a   :  { %1341 = vmatpush3.bf16.msra.mxu0 %v1340_v21 }
 0x71b   :  { %v789_v33 = vsel %vm243_vm5, %v1419_v26, %v1420_v23  ;;  %1342 = vmatprep.subr.bf16.mxu0 %v1670_v0 }
 0x71c   :  { %v1423_v22 = vpop.permute.xlu1 %1422 }
 0x71d   :  { %v1425_v29 = vunpack.i.h.bf16 %v1423_v22  ;;  %v1424_v32 = vunpack.i.l.bf16 %v1423_v22 }
 0x71f   :  { %v790_v34 = vsel %vm243_vm5, %v1424_v32, %v1425_v29 }
 0x720   :  { %v1343_v35 = vpack.c.bf16 %v790_v34, %v789_v33 }
 0x722   :  { %1344 = vmatpush3.bf16.msra.mxu0 %v1343_v35 }
 0x723   :  { %1357 = vmatprep.subr.bf16.mxu0 %v1670_v0 }
 0x7a6   :  { %v723_v24 = vpop.f32.mrb[6].mxu1 }
 0x7a7   :  { %v724_v37 = vadd.f32 %v1119_v36, %v723_v24  ;;  %v1254_v38 = vpop.f32.mrb[7].mxu1 }
 0x7a9   :  { %v729_v39 = vsel %vm243_vm5, %v724_v37, 0.0 }
 0x7aa   :  { %v730_v40 = vrot.slane %v729_v39, 4 }
 0x7ac   :  { %v731_v41 = vadd.f32 %v730_v40, %v729_v39 }
 0x7ae   :  { %v732_v42 = vrot.slane %v731_v41, 2 }
 0x7b0   :  { %v733_v43 = vadd.f32 %v732_v42, %v731_v41 }
 0x7b2   :  { %v734_v44 = vrot.slane %v733_v43, 1 }
 0x7b4   :  { %v735_v45 = vadd.f32 %v734_v44, %v733_v43 }
 0x7b6   :  { %v736_v25 = vmul.f32 0.125, %v735_v45 }
 0x7b8   :  { %v737_v46 = vsub.f32 %v724_v37, %v736_v25 }
 0x7ba   :  { %v738_v47 = vmul.f32 %v737_v46, %v737_v46 }
 0x7bc   :  { %v739_v49 = vsel %vm243_vm5, %v738_v47, 0.0 }
 0x7bd   :  { %v740_v50 = vrot.slane %v739_v49, 4 }
 0x7bf   :  { %v741_v51 = vadd.f32 %v740_v50, %v739_v49 }
 0x7c1   :  { %v742_v27 = vrot.slane %v741_v51, 2 }
 0x7c3   :  { %v743_v52 = vadd.f32 %v742_v27, %v741_v51 }
 0x7c5   :  { %v744_v53 = vrot.slane %v743_v52, 1 }
 0x7c7   :  { %v745_v54 = vadd.f32 %v744_v53, %v743_v52 }
 0x7c9   :  { %v746_v55 = vmul.f32 0.125, %v745_v54 }
 0x7cb   :  { %v747_v56 = vadd.f32 1e-05, %v746_v55 }
 0x7cd   :  { %1438 = vrsqrt.f32 %v747_v56 }
 0x7d7   :  { %v1439_v28 = vpop.eup %1438 }
 0x7d8   :  { %v749_v58 = vmul.f32 %v1439_v28, %v737_v46 }
 0x7da   :  { %v754_v60 = vmul.f32 %v1121_v57, %v749_v58 }
 0x7dc   :  { %v759_v61 = vadd.f32 %v1122_v59, %v754_v60 }
 0x7de   :  { %v760_v2 = vmul.f32 0.01, %v759_v61 }
 0x7e0   :  { %v761_v5 = vmax.f32 %v759_v61, %v760_v2 }
 0x7e2   :  { %1264 = vmatmul.mubr.msk.f32.vlgmr.msra.gmra.mrb[2].mxu0 %vm243_vm5, %v761_v5 }
 0x7e3   :  { %1359 = vmatpush3.bf16.msra.mxu0 %v1358_v3  ;;  %1293 = vmatprep.mubr.msk.f32.mxu0 %vm1671_vm0, %v1672_v1 }
 0x7e4   :  { %v965_v11 = vpop.f32.mrb[8].mxu1  ;;  %1360 = vmatprep.subr.bf16.mxu0 %v1670_v0  ;;  %v1127_v0 = vld [vmem:[#allocation14 + $0xf] ss:$0 sm:$0xff] }
 0x7e5   :  { %v966_v30 = vadd.f32 %v1125_v9, %v965_v11  ;;  %v1284_v12 = vpop.f32.mrb[9].mxu1 }
 0x7e7   :  { %v969_v31 = vmul.f32 0.01, %v966_v30  ;;  %1362 = vmatpush3.bf16.msra.mxu0 %v1361_v10 }
 0x7e9   :  { %v970_v13 = vmax.f32 %v966_v30, %v969_v31 }
 0x7eb   :  { %1294 = vmatmul.mubr.msk.f32.vlgmr.msra.gmra.mrb[4].mxu0 %vm243_vm5, %v970_v13 }
 0x8b5   :  { %v864_v15 = vpop.f32.mrb[2].mxu0 }
 0x8b6   :  { %v865_v16 = vadd.f32 %v1123_v14, %v864_v15  ;;  %v1265_v17 = vpop.f32.mrb[3].mxu0 }
 0x8b8   :  { %v869_v18 = vsel %vm868_vm11, %v865_v16, -inf }
 0x8b9   :  { %870 = vmax.xlane.f32.xlu1 %v869_v18 }
 0x8be   :  { %v1049_v19 = vpop.f32.mrb[4].mxu0 }
 0x8bf   :  { %v1295_v1 = vpop.f32.mrb[5].mxu0  ;;  %v1050_v20 = vadd.f32 %v1127_v0, %v1049_v19 }
 0x8c1   :  { %v1053_v23 = vsub.f32 0.0, %v1050_v20 }
 0x8c3   :  { %v1054_v29 = vmul.f32 1.442695, %v1053_v23 }
 0x8ca   :  { %1060 = vrot.lane.b32.xlu1 %v1925_v8, %s1665_s20  ;;  %s1679_s20 = smov 34  }
 0x946   :  { %v871_v21 = vpop.xlane.xlu1 %870 }
 0x947   :  { %v872_v22 = vsub.f32 %v865_v16, %v871_v21 }
 0x949   :  { %v873_v26 = vmul.f32 1.442695, %v872_v22 }
 0x94a   :  { %v1061_v38 = vpop.permute.xlu1 %1060 }
 0x94b   :  { %1440 = vpow2.f32 %v873_v26  ;;  %v1075_v39 = vsel %vm516_vm8, %v1911_v48, %v1061_v38 }
 0x94c   :  { %1442 = vpow2.f32 %v1054_v29  ;;  %v1076_v42 = vsel %vm496_vm7, %v1075_v39, %v1919_v4 }
 0x955   :  { %v1441_v32 = vpop.eup %1440 }
 0x956   :  { %v875_v33 = vsel %vm868_vm11, %v1441_v32, 0.0  ;;  %v1443_v34 = vpop.eup %1442 }
 0x957   :  { %876 = vadd.xlane.f32.xlu0 %v875_v33  ;;  %v1056_v35 = vadd.f32 1.0, %v1443_v34 }
 0x959   :  { %1444 = vrcp.f32 %v1056_v35 }
 0x963   :  { %v1445_v36 = vpop.eup %1444 }
 0x96d   :  { %1064 = vrot.lane.b32.xlu0 %v1445_v36, %s1678_s5 }
 0x9e4   :  { %v877_v8 = vpop.xlane.xlu0 %876 }
 0x9e5   :  { %1446 = vrcp.f32 %v877_v8 }
 0x9e8   :  { %v1065_v40 = vpop.permute.xlu0 %1064 }
 0x9e9   :  { %v1077_v43 = vsel %vm243_vm5, %v1076_v42, %v1065_v40 }
 0x9ef   :  { %v1447_v24 = vpop.eup %1446 }
 0x9f0   :  { %v879_v37 = vmul.f32 %v1447_v24, %v1441_v32 }
 0x9f2   :  { %1068 = vrot.lane.b32.xlu1 %v879_v37, %s1679_s20 }
 0x9f6   :  { %1072 = vrot.lane.b32.xlu1 %v865_v16, %s1679_s20 }
 0xa64   :  { %v1069_v41 = vpop.permute.xlu1 %1068 }
 0xa65   :  { %v1079_v44 = vsel %vm1078_vm12, %v1077_v43, %v1069_v41 }
 0xa68   :  { %v1073_v45 = vpop.permute.xlu1 %1072 }
 0xa69   :  { %v1081_v25 = vsel %vm1080_vm13, %v1079_v44, %v1073_v45  ;;  %1084 = vst.msk [vmem:[#allocation16 + $0x8] sm:$0xff] %vm1083_vm14, %v1073_v45 }
 0xa6a   :  { %1082 = vst [vmem:[#allocation16] sm:$0xff] %v1081_v25 }
 0xa6b   :  { %1635 = shalt.err (!%p1632_p12)
}
 0xa6c   :  { %s1636_s16 = scalar_lea.hbm %s1993_s8, 256 }
 0xa6d   :  { %p1637_p13 = scmp.ne.s32.totalorder %s1993_s8, %s1636_s16  ;;  %p1640_p0 = scmp.lt.u32.totalorder %s1636_s16, %s1993_s8 }
 0xa6f   :  { %p1642_p1 = pnand %p1640_p0, %p1637_p13 }
 0xa71   :  { %1645 = shalt.err (!%p1642_p1)
}
 0xa72   :  { %1094 = dma.vmem_to_hbm [thread:$0]  %s1092_s10, 256, %s1993_s8, [#allocation4]  }
 0xa73   :  { %1656 = dma.done.wait [#allocation4], 256  }
 0xa74   :  { %1657 = vsyncadd [#allocation4], 4294967040 }
 0xa75   :  { %1098 = vsyncpa [#allocation3], 1 }
 0xa76   :  { %1099 = vsyncpa [#allocation6], 1 }
 0xa77   :  { %1100 = vsyncpa [#allocation9], 1 }
 0xa78   :  { %1101 = vsyncpa [#allocation12], 1 }
 0xa79   :  { %1102 = vsyncpa [#allocation15], 1 }
 0xa7a   :  { %1103 = vsyncpa [#allocation4], 1 }

</bundles_post_ra>
